<compile_context>
chip_gen: v7x
topology: tpu7x:2x2x1
jax: 0.10.0
libtpu: 0.0.40
codegen_flags: <defaults>
</compile_context>

<pallas_src>
import jax
import jax.numpy as jnp
from jax.experimental import pallas as pl
from jax.experimental.pallas import tpu as pltpu


def _pert_embed_kernel(idx_ref, x_ref, pos_ref, w_ref, b_ref, tok_ref, out_ref):
    """One batch element per grid step.

    idx_ref : SMEM (B,)    int32 -- scalar-prefetched pert_index (consumed by the
                                    pos BlockSpec index_map; unused in the body)
    x_ref   : SMEM (B,)    f32   -- pert_expression values
    pos_ref : VMEM (1,1,E) f32   -- gathered positional row pos[pert_index[b]]
    w_ref   : VMEM (1,1,E) f32   -- Linear(1, E).weight[:, 0]
    b_ref   : VMEM (1,1,E) f32   -- Linear(1, E).bias
    tok_ref : VMEM (1,1,E) f32   -- pert_token
    out_ref : VMEM (1,1,E) f32
    """
    del idx_ref  # used only by the index_map (data-dependent gather)
    b = pl.program_id(0)
    x = x_ref[b]  # scalar expression value for this batch element
    # Fused: Linear(1, E) (x * W[:,0] + bias) + pos row + pert_token.
    out_ref[...] = x * w_ref[...] + b_ref[...] + pos_ref[...] + tok_ref[...]


def pert_embedder_forward(params, pert_index, pert_expression):
    """params: pos (1,T,E), embed_w (E,1), embed_b (E,), pert_token (1,E).
    pert_index: (B,) int, pert_expression: (B, 1) float.  Returns (B, 1, E)."""
    pos = params["pos"]                                        # (1, T, E)
    _, T, E = pos.shape
    B = pert_index.shape[0]

    idx = pert_index.astype(jnp.int32)                         # (B,)  -> SMEM (prefetch)
    x_vals = pert_expression.reshape(B).astype(jnp.float32)    # (B,)  -> SMEM
    pos3 = pos[0].reshape(T, 1, E)                             # (T, 1, E)
    w_row = params["embed_w"][:, 0].reshape(1, 1, E)           # Linear(1,E).weight
    b_row = params["embed_b"].reshape(1, 1, E)                 # Linear(1,E).bias
    tok = params["pert_token"].reshape(1, 1, E)

    grid_spec = pltpu.PrefetchScalarGridSpec(
        num_scalar_prefetch=1,
        grid=(B,),
        in_specs=[
            pl.BlockSpec(memory_space=pltpu.MemorySpace.SMEM),          # pert_expression
            pl.BlockSpec((1, 1, E), lambda b, idx: (idx[b], 0, 0)),     # pos row gather
            pl.BlockSpec((1, 1, E), lambda b, idx: (0, 0, 0)),          # weight
            pl.BlockSpec((1, 1, E), lambda b, idx: (0, 0, 0)),          # bias
            pl.BlockSpec((1, 1, E), lambda b, idx: (0, 0, 0)),          # pert_token
        ],
        out_specs=pl.BlockSpec((1, 1, E), lambda b, idx: (b, 0, 0)),
    )

    out = pl.pallas_call(
        _pert_embed_kernel,
        out_shape=jax.ShapeDtypeStruct((B, 1, E), jnp.float32),
        grid_spec=grid_spec,
        compiler_params=pltpu.CompilerParams(
            dimension_semantics=("parallel",)),   # v7x: shard batch across 2 TCs
    )(idx, x_vals, pos3, w_row, b_row, tok)
    return out  # (B, 1, E), matches PyTorch output layout


if __name__ == "__main__":
    # Small shapes consistent with the module: B cells, T genes, emb_dim E.
    # E chosen as 128 so stores are lane-dense (review item #5).
    B, T, E = 8, 16, 128

    root = jax.random.PRNGKey(0)
    k_pos, k_w, k_b, k_tok, k_idx, k_x = jax.random.split(root, 6)

    params = {
        "pos": jax.random.normal(k_pos, (1, T, E), jnp.float32) * 0.02,   # pos_embedding.pos
        "embed_w": jax.random.normal(k_w, (E, 1), jnp.float32) * 0.02,    # Linear(1,E).weight
        "embed_b": jax.random.normal(k_b, (E,), jnp.float32) * 0.02,      # Linear(1,E).bias
        "pert_token": jax.random.normal(k_tok, (1, E), jnp.float32),      # nn.init.normal_
    }
    pert_index = jax.random.randint(k_idx, (B,), 0, T, jnp.int32)         # one pert gene / cell
    pert_expression = jax.random.normal(k_x, (B, 1), jnp.float32)         # its expression value

    out = pert_embedder_forward(params, pert_index, pert_expression)
    jax.block_until_ready(out)

    # Pure-JAX reference (same math as the PyTorch forward).
    ref = (pert_expression[..., None] * params["embed_w"][:, 0] + params["embed_b"]  # Linear(1,E)
           + params["pos"][0][pert_index][:, None, :]                                # pert_pos
           + params["pert_token"])                                                   # pert_token
    assert out.shape == (B, 1, E)
    assert jnp.allclose(out, ref, atol=1e-5, rtol=1e-5)
    print("KERNEL_OK")
</pallas_src>

<mosaic_0001>
module attributes {stable_mosaic.version = 11 : i64} {
  func.func @_pert_embed_kernel(%arg0: i32, %arg1: memref<8xi32, #tpu.memory_space<smem>>, %arg2: memref<8xf32, #tpu.memory_space<smem>>, %arg3: memref<1x1x128xf32, #tpu.memory_space<vmem>>, %arg4: memref<1x1x128xf32, #tpu.memory_space<vmem>>, %arg5: memref<1x1x128xf32, #tpu.memory_space<vmem>>, %arg6: memref<1x1x128xf32, #tpu.memory_space<vmem>>, %arg7: memref<1x1x128xf32, #tpu.memory_space<vmem>>) attributes {dimension_semantics = [#tpu.dimension_semantics<parallel>], iteration_bounds = array<i64: 8>, scalar_prefetch = 1 : i64, scratch_operands = 0 : i64, tpu.core_type = #tpu.core_type<tc>, window_params = [{transform_indices = @transform_0, window_bounds = array<i64: 8>}, {transform_indices = @transform_1, window_bounds = array<i64: 1, 1, 128>}, {pipeline_mode = #tpu.pipeline_mode<synchronous>, transform_indices = @transform_2, window_bounds = array<i64: 1, 1, 128>}, {pipeline_mode = #tpu.pipeline_mode<synchronous>, transform_indices = @transform_3, window_bounds = array<i64: 1, 1, 128>}, {pipeline_mode = #tpu.pipeline_mode<synchronous>, transform_indices = @transform_4, window_bounds = array<i64: 1, 1, 128>}, {transform_indices = @transform_5, window_bounds = array<i64: 1, 1, 128>}]} {
    %0 = arith.index_cast %arg0 : i32 to index
    %1 = memref.load %arg2[%0] : memref<8xf32, #tpu.memory_space<smem>>
    %c0 = arith.constant 0 : index
    %c0_0 = arith.constant 0 : index
    %c0_1 = arith.constant 0 : index
    %2 = vector.load %arg4[%c0, %c0_0, %c0_1] : memref<1x1x128xf32, #tpu.memory_space<vmem>>, vector<1x1x128xf32>
    %3 = vector.broadcast %1 : f32 to vector<1x1x128xf32>
    %4 = arith.mulf %3, %2 : vector<1x1x128xf32>
    %c0_2 = arith.constant 0 : index
    %c0_3 = arith.constant 0 : index
    %c0_4 = arith.constant 0 : index
    %5 = vector.load %arg5[%c0_2, %c0_3, %c0_4] : memref<1x1x128xf32, #tpu.memory_space<vmem>>, vector<1x1x128xf32>
    %6 = arith.addf %4, %5 : vector<1x1x128xf32>
    %c0_5 = arith.constant 0 : index
    %c0_6 = arith.constant 0 : index
    %c0_7 = arith.constant 0 : index
    %7 = vector.load %arg3[%c0_5, %c0_6, %c0_7] : memref<1x1x128xf32, #tpu.memory_space<vmem>>, vector<1x1x128xf32>
    %8 = arith.addf %6, %7 : vector<1x1x128xf32>
    %c0_8 = arith.constant 0 : index
    %c0_9 = arith.constant 0 : index
    %c0_10 = arith.constant 0 : index
    %9 = vector.load %arg6[%c0_8, %c0_9, %c0_10] : memref<1x1x128xf32, #tpu.memory_space<vmem>>, vector<1x1x128xf32>
    %10 = arith.addf %8, %9 : vector<1x1x128xf32>
    %c0_11 = arith.constant 0 : index
    %c0_12 = arith.constant 0 : index
    %c0_13 = arith.constant 0 : index
    %11 = vector.load %arg7[%c0_11, %c0_12, %c0_13] : memref<1x1x128xf32, #tpu.memory_space<vmem>>, vector<1x1x128xf32>
    tpu.vector_store %arg7[%c0_11, %c0_12, %c0_13], %10 {strides = array<i32>} : memref<1x1x128xf32, #tpu.memory_space<vmem>>, vector<1x1x128xf32>,
    return
  }
  func.func @transform_0(%arg0: i32, %arg1: memref<8xi32, #tpu.memory_space<smem>>) -> i32 {
    %c0_i32 = arith.constant 0 : i32
    %c0_i32_0 = arith.constant 0 : i32
    return %c0_i32 : i32
  }
  func.func @transform_1(%arg0: i32, %arg1: memref<8xi32, #tpu.memory_space<smem>>) -> (i32, i32, i32) {
    %0 = arith.index_cast %arg0 : i32 to index
    %1 = memref.load %arg1[%0] : memref<8xi32, #tpu.memory_space<smem>>
    %c0_i32 = arith.constant 0 : i32
    %c0_i32_0 = arith.constant 0 : i32
    %c0_i32_1 = arith.constant 0 : i32
    return %1, %c0_i32, %c0_i32_0 : i32, i32, i32
  }
  func.func @transform_2(%arg0: i32, %arg1: memref<8xi32, #tpu.memory_space<smem>>) -> (i32, i32, i32) {
    %c0_i32 = arith.constant 0 : i32
    %c0_i32_0 = arith.constant 0 : i32
    %c0_i32_1 = arith.constant 0 : i32
    %c0_i32_2 = arith.constant 0 : i32
    return %c0_i32, %c0_i32_0, %c0_i32_1 : i32, i32, i32
  }
  func.func @transform_3(%arg0: i32, %arg1: memref<8xi32, #tpu.memory_space<smem>>) -> (i32, i32, i32) {
    %c0_i32 = arith.constant 0 : i32
    %c0_i32_0 = arith.constant 0 : i32
    %c0_i32_1 = arith.constant 0 : i32
    %c0_i32_2 = arith.constant 0 : i32
    return %c0_i32, %c0_i32_0, %c0_i32_1 : i32, i32, i32
  }
  func.func @transform_4(%arg0: i32, %arg1: memref<8xi32, #tpu.memory_space<smem>>) -> (i32, i32, i32) {
    %c0_i32 = arith.constant 0 : i32
    %c0_i32_0 = arith.constant 0 : i32
    %c0_i32_1 = arith.constant 0 : i32
    %c0_i32_2 = arith.constant 0 : i32
    return %c0_i32, %c0_i32_0, %c0_i32_1 : i32, i32, i32
  }
  func.func @transform_5(%arg0: i32, %arg1: memref<8xi32, #tpu.memory_space<smem>>) -> (i32, i32, i32) {
    %c0_i32 = arith.constant 0 : i32
    %c0_i32_0 = arith.constant 0 : i32
    %c0_i32_1 = arith.constant 0 : i32
    return %arg0, %c0_i32, %c0_i32_0 : i32, i32, i32
  }
}

</mosaic_0001>

<bundles_post_ra>
// kernel: tpu_custom_call.1
= control target key start
LH: loop header
LB: loop body
LE: loop exit
PB: predicated region body
PF: predicated region fallthrough
CT: control target
= control target key end

     0   :  { %s874_s0 = inlined_call_operand.hbm [shape: s32[8], index: 0, kind: input, shape index: {}]   ;;  %s875_s1 = inlined_call_operand.vmem [shape: f32[8], index: 1, kind: input, shape index: {}]   ;;  %s876_s2 = inlined_call_operand.hbm [shape: f32[16,1,128], index: 2, kind: input, shape index: {}]   ;;  %s877_s3 = inlined_call_operand.vmem [shape: f32[1,1,128], index: 3, kind: input, shape index: {}]   ;;  %s878_s4 = inlined_call_operand.vmem [shape: f32[1,1,128], index: 4, kind: input, shape index: {}]   ;;  %s879_s5 = inlined_call_operand.vmem [shape: f32[1,1,128], index: 5, kind: input, shape index: {}]   ;;  %s880_s6 = inlined_call_operand.hbm [shape: f32[8,1,128], index: 6, kind: output, shape index: {}]  }
   0x1   :  { %884 = sst [smem:[#allocation17_spill]] %s875_s1  ;;  %s454_s23 = scalar_lea.hbm %s874_s0, 16 }
   0x2   :  { %p455_p0 = scmp.ne.s32.totalorder %s874_s0, %s454_s23  ;;  %p458_p1 = scmp.lt.u32.totalorder %s454_s23, %s874_s0 }
   0x4   :  { %p460_p2 = pnand %p458_p1, %p455_p0 }
   0x6   :  { %463 = shalt.err (!%p460_p2)  }
   0x7   :  { %s607_s28 = smov [#allocation3]  }
   0x8   :  { %12 = dma.hbm_to_smem %s874_s0, 16, %s607_s28, [#allocation2] }
   0x9   :  { %565 = dma.done.wait [#allocation2], 16 }
   0xa   :  { %566 = vsyncadd [#allocation2], 4294967280 }
   0xb   :  { %14 = sfence }
   0xc   :  { %15 = vsyncpa [#allocation7], 0 }
   0xd   :  { %16 = vsyncpa [#allocation5], 0 }
   0xe   :  { %18 = vsyncpa [#allocation5 + $0x1], 0 }
   0xf   :  { %19 = vsyncpa [#allocation6], 0 }
  0x10   :  { %21 = vsyncpa [#allocation6 + $0x1], 0  ;;  %s658_s7 = smov 0   ;;  %s660_s8 = smov 0  }
  0x11   :  { %s662_s9 = smov 0   ;;  %s664_s10 = smov 0  }
  0x12   :  { %s666_s11 = smov 0   ;;  %s668_s12 = smov 0  }
  0x13   :  { %s670_s0 = smov 0  }
  0x14 LB: > { %s692_s13 = sadd.s32 4294967295, %s605_s0   ;;  %s358_s14 = sadd.s32 4294967294, %s605_s0   ;;  %s605_s0 = sphi %s670_s0, %s905_s0   ;;  %s601_s12 = sphi %s668_s12, %s904_s12   ;;  %s597_s11 = sphi %s666_s11, %s903_s11   ;;  %s593_s10 = sphi %s664_s10, %s902_s10   ;;  %s589_s9 = sphi %s662_s9, %s901_s9   ;;  %s585_s8 = sphi %s660_s8, %s900_s8   ;;  %s581_s7 = sphi %s658_s7, %s899_s7  }
  0x15   : > { %s696_s15 = sadd.s32 1, %s605_s0   ;;  %p70_p3 = scmp.ne.s32.totalorder %s597_s11, %s593_s10 }
  0x16   : > { %p882_p4 = scmp.eq.s32.totalorder %s692_s13, 0  ;;  %s143_s16 = ssub.s32 %s605_s0, %s696_s15 }
  0x17   : > { %p144_p5 = scmp.eq.s32.totalorder %s143_s16, 0  ;;  %s146_s17 = sadd.s32 1, %s589_s9 }
  0x18   : > { %p705_p6 = por %p882_p4, %p70_p3  ;;  %p156_p7 = scmp.ne.s32.totalorder %s589_s9, %s585_s8 }
  0x19   : > { %s712_s19 = scalar_select %p144_p5, %s589_s9, %s146_s17  }
  0x1a   : > { %s885_s18 = scalar_select %p705_p6, 1, 0 }
  0x1b   : > { %p157_p8 = scmp.eq.s32.totalorder %s692_s13, 7  ;;  %p162_p9 = scmp.ne.s32.totalorder %s585_s8, %s581_s7 }
  0x1c   : > { %p163_p10 = scmp.eq.s32.totalorder %s358_s14, 7  ;;  %p359_p11 = scmp.ge.s32.totalorder %s605_s0, 1 }
  0x1d   : > { %p718_p12 = por %p157_p8, %p156_p7  ;;  %p170_p13 = scmp.lt.s32.totalorder %s605_s0, 9 }
  0x1e   : > { %p723_p0 = por %p163_p10, %p162_p9  ;;  %s889_s1 = sld [smem:[#allocation17_spill]] }
  0x1f   : > { %s886_s20 = scalar_select %p718_p12, 1, 0 }
  0x20   : > { %s887_s21 = scalar_select %p723_p0, 1, 0 }
  0x21   : > { %p727_p1 = pnand %p359_p11, %p170_p13  ;;  %s52_s26 = sld [smem:[#allocation3 + %s605_s0]] }
  0x22   : > { %s53_s28 = sld [smem:[#allocation3 + %s696_s15]]  ;;  %p64_p5 = scmp.ne.s32.totalorder %s601_s12, %s597_s11 }
  0x23   : > { %p378_p2 = pneg %p727_p1 }
  0x24   : > { %s183_s25 = sshll.u32 %s889_s1, 4  ;;  %s184_s25 = int_to_ptr.vmem [resolvable:$true] %s183_s25 }
  0x25   : > { %p739_p3 = pnand %p378_p2, %p882_p4  ;;  %s464_s29 = scalar_lea.vmem %s184_s25, 16 }
  0x26   : > { %p465_p7 = scmp.ne.s32.totalorder %s184_s25, %s464_s29  ;;  %p472_p11 = scmp.lt.s32.totalorder %s184_s25, %s184_s25 }
  0x27   : > { %p466_p8 = pneg %p739_p3  ;;  %p473_p13 = scmp.lt.s32.totalorder %s464_s29, %s464_s29 }
  0x29   : > { %p467_p9 = pnand %p466_p8, %p465_p7  ;;  %p474_p0 = por %p473_p13, %p472_p11 }
  0x2b   : > { %p468_p10 = pneg %p467_p9 }
  0x2d   : > { %p475_p12 = pnand %p474_p0, %p468_p10 }
  0x2f   : > { %478 = shalt.err (!%p475_p12)
}
  0x30   : > { %s608_s30 = smov [#allocation4]   ;;  %p65_p2 = scmp.eq.s32.totalorder %s605_s0, 0 }
  0x31   : > { %381 = dma.vmem_to_smem (!%p739_p3), %s184_s25, 16, %s608_s30, [#allocation7]  }
  0x32   : > { %s57_s10 = sadd.s32 1, %s601_s12  ;;  %p66_p7 = por %p65_p2, %p64_p5 }
  0x33   : > { %s54_s14 = ssub.s32 %s52_s26, %s53_s28  ;;  %p393_p8 = scmp.lt.s32.totalorder %s605_s0, 8 }
  0x34   : > { %p55_p0 = scmp.eq.s32.totalorder %s54_s14, 0  ;;  %s203_s16 = sand.u32 1, %s601_s12  }
  0x35   : > { %s370_s17 = scalar_select %p66_p7, [#allocation3], [#allocation10] }
  0x36   : > { %s758_s23 = scalar_select %p55_p0, %s601_s12, %s57_s10  }
  0x37   : > { %s371_s24 = scalar_select %p66_p7, %s605_s0, 0 }
  0x38   : > { %891 = sst [smem:[#allocation16_spill]] %s758_s23  ;;  %s907_s17 = smov (!%p393_p8, %s370_s17), [#allocation11] }
  0x39   : > { %s909_s24 = smov (!%p393_p8, %s371_s24), 0  ;;  %p761_p12 = pnand %p393_p8, %p66_p7 }
  0x3a   : > { %s207_s25 = sld [smem:[%s907_s17 + %s909_s24]]  ;;  %s206_s29 = scalar_lea.vmem [#allocation8], %s203_s16 }
  0x3b   : > { %s214_s30 = sshll.u32 %s206_s29, 4  ;;  %s204_s1 = scalar_lea.sflag [#allocation5], %s203_s16  ;;  %s765_s30 = int_to_ptr.vmem [resolvable:$true] %s214_s30 }
  0x3c   : > { %p481_p5 = pneg %p761_p12 }
  0x40   : > { %s362_s26 = sshll.u32 %s207_s25, 4  ;;  %s484_s25 = scalar_lea.hbm %s876_s2, 256 }
  0x41   : > { %s770_s10 = scalar_lea.hbm %s876_s2, %s362_s26 }
  0x42   : > { %s479_s23 = scalar_lea.hbm %s770_s10, 16  ;;  %p485_p11 = scmp.lt.u32.totalorder %s770_s10, %s876_s2 }
  0x43   : > { %p480_p3 = scmp.ne.s32.totalorder %s770_s10, %s479_s23  ;;  %p486_p13 = scmp.lt.u32.totalorder %s484_s25, %s479_s23 }
  0x44   : > { %p488_p7 = scmp.lt.u32.totalorder %s479_s23, %s770_s10 }
  0x45   : > { %p482_p9 = pnand %p481_p5, %p480_p3  ;;  %p487_p2 = por %p486_p13, %p485_p11 }
  0x47   : > { %p483_p10 = pneg %p482_p9  ;;  %p489_p8 = por %p488_p7, %p487_p2 }
  0x49   : > { %p490_p0 = pnand %p489_p8, %p483_p10 }
  0x4b   : > { %493 = shalt.err (!%p490_p0)
}
  0x4c   : > { %s494_s16 = scalar_lea.vmem %s765_s30, 16  ;;  %s609_s28 = smov [#allocation8]  }
  0x4d   : > { %p495_p3 = scmp.ne.s32.totalorder %s765_s30, %s494_s16  ;;  %s499_s14 = sshll.u32 %s609_s28, 4  ;;  %s500_s14 = int_to_ptr.vmem [resolvable:$false] %s499_s14 }
  0x4e   : > { %s501_s17 = scalar_lea.vmem %s500_s14, 32  ;;  %p502_p6 = scmp.lt.s32.totalorder %s765_s30, %s500_s14 }
  0x4f   : > { %p497_p9 = pnand %p495_p3, %p481_p5  ;;  %p503_p11 = scmp.lt.s32.totalorder %s501_s17, %s494_s16 }
  0x51   : > { %p498_p4 = pneg %p497_p9  ;;  %p504_p13 = por %p503_p11, %p502_p6 }
  0x53   : > { %p505_p2 = pnand %p504_p13, %p498_p4 }
  0x55   : > { %508 = shalt.err (!%p505_p2)
}
  0x56   : > { %387 = dma.hbm_to_vmem [thread:$0]  (!%p761_p12), %s770_s10, 16, %s765_s30, %s204_s1  }
  0x57   : > { %223 = sbr.rel (%p727_p1) target bundleno = 129 (0x81), region = 40  ;;  %p893_p5 = scmp.eq.s32.totalorder (!%p727_p1), %s692_s13, 0 }
  0x5e   : > { %568 = dma.done.wait (%p893_p5), [#allocation7], 16   ;;  %p894_p10 = pmov %p893_p5 }
  0x5f   : > { %s229_s23 = sand.u32 1, %s597_s11   ;;  %p895_p4 = scmp.ne.s32.totalorder %s885_s18, 0 }
  0x60   : > { %570 = vsyncadd (%p894_p10), [#allocation7], 4294967280  ;;  %s230_s24 = scalar_lea.sflag [#allocation5], %s229_s23  ;;  %s232_s25 = scalar_lea.vmem [#allocation8], %s229_s23 }
  0x61   : > { %572 = dma.done.wait (%p895_p4), %s230_s24, 16  }
  0x62   : > { %574 = vsyncadd (%p895_p4), %s230_s24, 4294967280 }
  0x63   : > { %237 = sfence }
  0x64   : > { %s259_s1 = sld [smem:[#allocation4 + %s692_s13]]  ;;  %s256_s22 = sand.u32 1, %s585_s8   ;;  %v260_v0 = vld [vmem:[%s877_s3] sm:$0x1] }
  0x65   : > { %v263_v2 = vld [vmem:[%s878_s4] sm:$0x1]  ;;  %s257_s16 = scalar_lea.vmem [#allocation9], %s256_s22  ;;  %s365_s14 = sshll.u32 %s692_s13, 4 }
  0x66   : > { %v265_v4 = vld [vmem:[%s232_s25] sm:$0x1]  ;;  %s283_s28 = sshll.u32 %s257_s16, 4  ;;  %s825_s24 = scalar_lea.hbm %s880_s6, %s365_s14  ;;  %s820_s28 = int_to_ptr.vmem [resolvable:$true] %s283_s28 }
  0x67   : > { %v267_v6 = vld [vmem:[%s879_s5] sm:$0x1]  ;;  %s271_s25 = scalar_lea.sflag [#allocation6], %s256_s22  ;;  %p896_p1 = scmp.ne.s32.totalorder %s886_s20, 0 }
  0x68   : > { %s610_s13 = smov [#allocation9]  }
  0x69   : > { %s513_s27 = sshll.u32 %s610_s13, 4  ;;  %s514_s27 = int_to_ptr.vmem [resolvable:$false] %s513_s27 }
  0x6a   : > { %v261_v1 = vstv %s259_s1  ;;  %s509_s1 = scalar_lea.vmem %s820_s28, 16  ;;  %s515_s30 = scalar_lea.vmem %s514_s27, 32 }
  0x6b   : > { %v262_v3 = vmul.f32 %v261_v1, %v260_v0  ;;  %p510_p6 = scmp.ne.s32.totalorder %s820_s28, %s509_s1  ;;  %p516_p8 = scmp.lt.s32.totalorder %s820_s28, %s514_s27 }
  0x6c   : > { %p517_p0 = scmp.lt.s32.totalorder %s515_s30, %s509_s1 }
  0x6d   : > { %v264_v5 = vadd.f32 %v263_v2, %v262_v3  ;;  %p511_p12 = pnand %p510_p6, %p896_p1 }
  0x6e   : > { %p518_p3 = por %p517_p0, %p516_p8 }
  0x6f   : > { %v266_v7 = vadd.f32 %v265_v4, %v264_v5  ;;  %p512_p7 = pneg %p511_p12 }
  0x71   : > { %v268_v8 = vadd.f32 %v267_v6, %v266_v7  ;;  %p519_p9 = pnand %p518_p3, %p512_p7 }
  0x73   : > { %269 = vst [vmem:[%s257_s16] sm:$0x1] %v268_v8 }
  0x74   : > { %522 = shalt.err (!%p519_p9)
}
  0x75   : > { %s523_s22 = scalar_lea.hbm %s825_s24, 16  ;;  %s527_s18 = scalar_lea.hbm %s880_s6, 128 }
  0x76   : > { %p524_p11 = scmp.ne.s32.totalorder %s825_s24, %s523_s22  ;;  %p528_p5 = scmp.lt.u32.totalorder %s825_s24, %s880_s6 }
  0x77   : > { %p529_p10 = scmp.lt.u32.totalorder %s527_s18, %s523_s22  ;;  %p531_p6 = scmp.lt.u32.totalorder %s523_s22, %s825_s24 }
  0x78   : > { %p525_p13 = pnand %p524_p11, %p896_p1 }
  0x79   : > { %p530_p4 = por %p529_p10, %p528_p5 }
  0x7a   : > { %p526_p2 = pneg %p525_p13 }
  0x7b   : > { %p532_p12 = por %p531_p6, %p530_p4 }
  0x7d   : > { %p533_p7 = pnand %p532_p12, %p526_p2 }
  0x7f   : > { %536 = shalt.err (!%p533_p7)
}
  0x80   : > { %376 = dma.vmem_to_hbm [thread:$0]  (%p896_p1), %s820_s28, 16, %s825_s24, %s271_s25  }
  0x81 PF: > { %p395_p8 = scmp.ge.s32.totalorder %s605_s0, 2  ;;  %s295_s14 = sand.u32 1, %s581_s7  }
  0x82   : > { %p897_p0 = scmp.ne.s32.totalorder %s887_s21, 0  ;;  %s296_s17 = scalar_lea.sflag [#allocation6], %s295_s14 }
  0x84   : > { %p389_p3 = pnand %p395_p8, %p897_p0 }
  0x86   : > { %576 = dma.done.wait (!%p389_p3), %s296_s17, 16  }
  0x87   : > { %578 = vsyncadd (!%p389_p3), %s296_s17, 4294967280  ;;  %s898_s20 = sld [smem:[#allocation16_spill]]  ;;  %p24_p1 = scmp.ge.s32.totalorder %s696_s15, 10  }
  0x88   : > { %s899_s7 = smov %s585_s8  ;;  %s900_s8 = smov %s589_s9 }
  0x89   : > { %s901_s9 = smov %s712_s19  ;;  %s902_s10 = smov %s597_s11 }
  0x8a   : > { %s903_s11 = smov %s601_s12  ;;  %s905_s0 = smov %s696_s15 }
  0x8b   :  { %26 = sbr.rel (!%p24_p1) target bundleno = 20 (0x14), region = 90 }
  0x8d   : > { %s904_s12 = smov %s898_s20 }
  0x92   :  { %300 = vsyncpa [#allocation5], 1 }
  0x93   :  { %302 = vsyncpa [#allocation5 + $0x1], 1 }
  0x94   :  { %303 = vsyncpa [#allocation6], 1 }
  0x95   :  { %305 = vsyncpa [#allocation6 + $0x1], 1 }
  0x96   :  { %306 = vsyncpa [#allocation7], 1 }
  0x97   :  { %308 = vsyncpa [#allocation7 + $0x1], 1 }

</bundles_post_ra>
